<compile_context>
chip_gen: v6e
topology: v6e:2x2x1
jax: 0.10.0
libtpu: 0.0.40
codegen_flags: <defaults>
</compile_context>

<pallas_src>
import jax
import jax.numpy as jnp
from jax.experimental import pallas as pl
from jax.experimental.pallas import tpu as pltpu


def _rmse_kernel(out_blk, tgt_blk, loss_ref, cnt_ref):
    """Grid: (b, k). b indexes the batch sample, k walks row tiles of the
    (rows, 128) slab. loss_ref / cnt_ref are the (1, 8, 128) output blocks for
    sample b; they stay VMEM-resident across the k ("arbitrary") axis and act
    as accumulators."""
    k = pl.program_id(1)

    @pl.when(k == 0)
    def _init():
        loss_ref[...] = jnp.zeros_like(loss_ref)
        cnt_ref[...] = jnp.zeros_like(cnt_ref)

    t = tgt_blk[0].astype(jnp.float32)        # (R, 128)
    o = out_blk[0].astype(jnp.float32)        # (R, 128)

    valid = t > 0                              # val_pixels
    d = jnp.where(valid, t - o, 0.0)           # masked error
    sq = (d * d).reshape(-1, 8, 128)           # vreg-aligned split of sublanes
    ones = jnp.where(valid, 1.0, 0.0).reshape(-1, 8, 128)

    loss_ref[...] += jnp.sum(sq, axis=0, keepdims=True)    # (1, 8, 128)
    cnt_ref[...] += jnp.sum(ones, axis=0, keepdims=True)   # (1, 8, 128)


def rmse_pallas(outputs, target, *, tile_rows=2048):
    """Equivalent of RMSE.forward(outputs, target) -> scalar float32."""
    assert outputs.shape == target.shape
    B = outputs.shape[0]
    o2 = outputs.reshape(B, -1)                # keep native dtype (no HBM upcast pass)
    t2 = target.reshape(B, -1)
    N = o2.shape[1]

    # View each sample as a (rows, 128) lane-dense slab.
    rows = pl.cdiv(N, 128)
    # Row tile: multiple of 8, clamped to the problem size so tiny inputs run
    # in a single grid step per sample.
    R = max(8, min(tile_rows, ((rows + 7) // 8) * 8))
    rows_pad = pl.cdiv(rows, R) * R
    n_pad = rows_pad * 128
    if n_pad != N:
        # Zero padding is exact: padded target == 0 -> mask == 0 -> no contribution.
        o2 = jnp.pad(o2, ((0, 0), (0, n_pad - N)))
        t2 = jnp.pad(t2, ((0, 0), (0, n_pad - N)))
    o3 = o2.reshape(B, rows_pad, 128)
    t3 = t2.reshape(B, rows_pad, 128)

    grid = (B, rows_pad // R)

    loss_lanes, cnt_lanes = pl.pallas_call(
        _rmse_kernel,
        out_shape=(
            jax.ShapeDtypeStruct((B, 8, 128), jnp.float32),  # per-sample loss partials
            jax.ShapeDtypeStruct((B, 8, 128), jnp.float32),  # per-sample valid counts
        ),
        grid_spec=pltpu.PrefetchScalarGridSpec(
            num_scalar_prefetch=0,
            grid=grid,
            in_specs=[
                pl.BlockSpec((1, R, 128), lambda b, k: (b, k, 0)),  # outputs
                pl.BlockSpec((1, R, 128), lambda b, k: (b, k, 0)),  # target
            ],
            out_specs=[
                pl.BlockSpec((1, 8, 128), lambda b, k: (b, 0, 0)),
                pl.BlockSpec((1, 8, 128), lambda b, k: (b, 0, 0)),
            ],
        ),
        compiler_params=pltpu.CompilerParams(
            dimension_semantics=("parallel", "arbitrary")),
    )(o3, t3)

    # Tiny epilogue in XLA: per-batch rmse, then batch mean.
    loss = jnp.sum(loss_lanes, axis=(1, 2))   # (B,)
    cnt = jnp.sum(cnt_lanes, axis=(1, 2))     # (B,)
    return jnp.mean(jnp.sqrt(loss / cnt))


def rmse_ref(outputs, target):
    """Pure-JAX reference mirroring the PyTorch module."""
    B = outputs.shape[0]
    o = outputs.reshape(B, -1).astype(jnp.float32)
    t = target.reshape(B, -1).astype(jnp.float32)
    mask = (t > 0).astype(jnp.float32)
    err = (t * mask - o * mask) ** 2
    loss = jnp.sum(err, axis=-1)
    cnt = jnp.sum(mask, axis=-1)
    return jnp.mean(jnp.sqrt(loss / cnt))


if __name__ == "__main__":
    key = jax.random.PRNGKey(0)
    k1, k2, k3 = jax.random.split(key, 3)

    # Main shape consistent with the module (NCHW).
    B, C, H, W = 2, 4, 16, 16
    outputs = jax.random.normal(k1, (B, C, H, W), dtype=jnp.float32)
    # Target: positive depth-like values with ~30% invalid (zero) pixels.
    depth = jnp.abs(jax.random.normal(k2, (B, C, H, W), dtype=jnp.float32)) + 0.1
    valid = (jax.random.uniform(k3, (B, C, H, W)) > 0.3).astype(jnp.float32)
    target = depth * valid

    got = jax.block_until_ready(rmse_pallas(outputs, target))
    want = jax.block_until_ready(rmse_ref(outputs, target))
    assert jnp.allclose(got, want, rtol=1e-5, atol=1e-5), (got, want)

    # Also exercise the non-128-aligned tail path once.
    k4, k5, k6 = jax.random.split(k3, 3)
    o_odd = jax.random.normal(k4, (2, 3, 15, 17), dtype=jnp.float32)
    d_odd = jnp.abs(jax.random.normal(k5, (2, 3, 15, 17), dtype=jnp.float32)) + 0.1
    v_odd = (jax.random.uniform(k6, (2, 3, 15, 17)) > 0.3).astype(jnp.float32)
    t_odd = d_odd * v_odd
    got2 = jax.block_until_ready(rmse_pallas(o_odd, t_odd))
    want2 = jax.block_until_ready(rmse_ref(o_odd, t_odd))
    assert jnp.allclose(got2, want2, rtol=1e-5, atol=1e-5), (got2, want2)

    print("KERNEL_OK")
</pallas_src>

<mosaic_0001>
module attributes {stable_mosaic.version = 11 : i64} {
  func.func @_rmse_kernel(%arg0: i32, %arg1: i32, %arg2: memref<1x8x128xf32, #tpu.memory_space<vmem>>, %arg3: memref<1x8x128xf32, #tpu.memory_space<vmem>>, %arg4: memref<1x8x128xf32, #tpu.memory_space<vmem>>, %arg5: memref<1x8x128xf32, #tpu.memory_space<vmem>>) attributes {dimension_semantics = [#tpu.dimension_semantics<parallel>, #tpu.dimension_semantics<arbitrary>], iteration_bounds = array<i64: 2, 1>, scalar_prefetch = 0 : i64, scratch_operands = 0 : i64, tpu.core_type = #tpu.core_type<tc>, window_params = [{transform_indices = @transform_0, window_bounds = array<i64: 1, 8, 128>}, {transform_indices = @transform_1, window_bounds = array<i64: 1, 8, 128>}, {transform_indices = @transform_2, window_bounds = array<i64: 1, 8, 128>}, {transform_indices = @transform_3, window_bounds = array<i64: 1, 8, 128>}]} {
    %c0_i32 = arith.constant 0 : i32
    %0 = arith.cmpi eq, %arg1, %c0_i32 : i32
    %1 = arith.extui %0 : i1 to i32
    %c0_i32_0 = arith.constant 0 : i32
    %2 = arith.cmpi ne, %1, %c0_i32_0 : i32
    scf.if %2 {
      %cst_23 = arith.constant 0.000000e+00 : f32
      %28 = vector.broadcast %cst_23 : f32 to vector<1x8x128xf32>
      %c0_24 = arith.constant 0 : index
      %c0_25 = arith.constant 0 : index
      %c0_26 = arith.constant 0 : index
      %29 = vector.load %arg4[%c0_24, %c0_25, %c0_26] : memref<1x8x128xf32, #tpu.memory_space<vmem>>, vector<1x8x128xf32>
      tpu.vector_store %arg4[%c0_24, %c0_25, %c0_26], %28 {strides = array<i32>} : memref<1x8x128xf32, #tpu.memory_space<vmem>>, vector<1x8x128xf32>,
      %cst_27 = arith.constant 0.000000e+00 : f32
      %30 = vector.broadcast %cst_27 : f32 to vector<1x8x128xf32>
      %c0_28 = arith.constant 0 : index
      %c0_29 = arith.constant 0 : index
      %c0_30 = arith.constant 0 : index
      %31 = vector.load %arg5[%c0_28, %c0_29, %c0_30] : memref<1x8x128xf32, #tpu.memory_space<vmem>>, vector<1x8x128xf32>
      tpu.vector_store %arg5[%c0_28, %c0_29, %c0_30], %30 {strides = array<i32>} : memref<1x8x128xf32, #tpu.memory_space<vmem>>, vector<1x8x128xf32>,
    } else {
    }
    %c0 = arith.constant 0 : index
    %c0_1 = arith.constant 0 : index
    %c0_2 = arith.constant 0 : index
    %3 = vector.load %arg3[%c0, %c0_1, %c0_2] : memref<1x8x128xf32, #tpu.memory_space<vmem>>, vector<1x8x128xf32>
    %4 = vector.shape_cast %3 : vector<1x8x128xf32> to vector<8x128xf32>
    %c0_3 = arith.constant 0 : index
    %c0_4 = arith.constant 0 : index
    %c0_5 = arith.constant 0 : index
    %5 = vector.load %arg2[%c0_3, %c0_4, %c0_5] : memref<1x8x128xf32, #tpu.memory_space<vmem>>, vector<1x8x128xf32>
    %6 = vector.shape_cast %5 : vector<1x8x128xf32> to vector<8x128xf32>
    %cst = arith.constant 0.000000e+00 : f32
    %7 = vector.broadcast %cst : f32 to vector<8x128xf32>
    %8 = arith.cmpf ogt, %4, %7 : vector<8x128xf32>
    %9 = arith.subf %4, %6 : vector<8x128xf32>
    %cst_6 = arith.constant 0.000000e+00 : f32
    %10 = vector.broadcast %cst_6 : f32 to vector<8x128xf32>
    %11 = arith.select %8, %9, %10 : vector<8x128xi1>, vector<8x128xf32>
    %12 = arith.mulf %11, %11 : vector<8x128xf32>
    %13 = vector.shape_cast %12 : vector<8x128xf32> to vector<1x8x128xf32>
    %cst_7 = arith.constant 1.000000e+00 : f32
    %cst_8 = arith.constant 0.000000e+00 : f32
    %14 = vector.broadcast %cst_7 : f32 to vector<8x128xf32>
    %15 = vector.broadcast %cst_8 : f32 to vector<8x128xf32>
    %16 = arith.select %8, %14, %15 : vector<8x128xi1>, vector<8x128xf32>
    %17 = vector.shape_cast %16 : vector<8x128xf32> to vector<1x8x128xf32>
    %c0_9 = arith.constant 0 : index
    %c0_10 = arith.constant 0 : index
    %c0_11 = arith.constant 0 : index
    %18 = vector.load %arg4[%c0_9, %c0_10, %c0_11] : memref<1x8x128xf32, #tpu.memory_space<vmem>>, vector<1x8x128xf32>
    %cst_12 = arith.constant dense<0.000000e+00> : vector<8x128xf32>
    %19 = vector.multi_reduction <add>, %13, %cst_12 [0] : vector<1x8x128xf32> to vector<8x128xf32>
    %20 = vector.shape_cast %19 : vector<8x128xf32> to vector<1x8x128xf32>
    %21 = arith.addf %18, %20 : vector<1x8x128xf32>
    %c0_13 = arith.constant 0 : index
    %c0_14 = arith.constant 0 : index
    %c0_15 = arith.constant 0 : index
    %22 = vector.load %arg4[%c0_13, %c0_14, %c0_15] : memref<1x8x128xf32, #tpu.memory_space<vmem>>, vector<1x8x128xf32>
    tpu.vector_store %arg4[%c0_13, %c0_14, %c0_15], %21 {strides = array<i32>} : memref<1x8x128xf32, #tpu.memory_space<vmem>>, vector<1x8x128xf32>,
    %c0_16 = arith.constant 0 : index
    %c0_17 = arith.constant 0 : index
    %c0_18 = arith.constant 0 : index
    %23 = vector.load %arg5[%c0_16, %c0_17, %c0_18] : memref<1x8x128xf32, #tpu.memory_space<vmem>>, vector<1x8x128xf32>
    %cst_19 = arith.constant dense<0.000000e+00> : vector<8x128xf32>
    %24 = vector.multi_reduction <add>, %17, %cst_19 [0] : vector<1x8x128xf32> to vector<8x128xf32>
    %25 = vector.shape_cast %24 : vector<8x128xf32> to vector<1x8x128xf32>
    %26 = arith.addf %23, %25 : vector<1x8x128xf32>
    %c0_20 = arith.constant 0 : index
    %c0_21 = arith.constant 0 : index
    %c0_22 = arith.constant 0 : index
    %27 = vector.load %arg5[%c0_20, %c0_21, %c0_22] : memref<1x8x128xf32, #tpu.memory_space<vmem>>, vector<1x8x128xf32>
    tpu.vector_store %arg5[%c0_20, %c0_21, %c0_22], %26 {strides = array<i32>} : memref<1x8x128xf32, #tpu.memory_space<vmem>>, vector<1x8x128xf32>,
    return
  }
  func.func @transform_0(%arg0: i32, %arg1: i32) -> (i32, i32, i32) {
    %c0_i32 = arith.constant 0 : i32
    %c0_i32_0 = arith.constant 0 : i32
    return %arg0, %arg1, %c0_i32 : i32, i32, i32
  }
  func.func @transform_1(%arg0: i32, %arg1: i32) -> (i32, i32, i32) {
    %c0_i32 = arith.constant 0 : i32
    %c0_i32_0 = arith.constant 0 : i32
    return %arg0, %arg1, %c0_i32 : i32, i32, i32
  }
  func.func @transform_2(%arg0: i32, %arg1: i32) -> (i32, i32, i32) {
    %c0_i32 = arith.constant 0 : i32
    %c0_i32_0 = arith.constant 0 : i32
    %c0_i32_1 = arith.constant 0 : i32
    return %arg0, %c0_i32, %c0_i32_0 : i32, i32, i32
  }
  func.func @transform_3(%arg0: i32, %arg1: i32) -> (i32, i32, i32) {
    %c0_i32 = arith.constant 0 : i32
    %c0_i32_0 = arith.constant 0 : i32
    %c0_i32_1 = arith.constant 0 : i32
    return %arg0, %c0_i32, %c0_i32_0 : i32, i32, i32
  }
}

</mosaic_0001>

<bundles_post_ra>
// kernel: tpu_custom_call.1
= control target key start
LH: loop header
LB: loop body
LE: loop exit
PB: predicated region body
PF: predicated region fallthrough
CT: control target
= control target key end

     0   :  { %9 = vsyncpa [#allocation3], 0  ;;  %s940_s0 = inlined_call_operand.hbm [shape: f32[2,8,128], index: 0, kind: input, shape index: {}]   ;;  %s941_s1 = inlined_call_operand.hbm [shape: f32[2,8,128], index: 1, kind: input, shape index: {}]   ;;  %s942_s2 = inlined_call_operand.hbm [shape: f32[2,8,128], index: 2, kind: output, shape index: {0}]   ;;  %s943_s3 = inlined_call_operand.hbm [shape: f32[2,8,128], index: 3, kind: output, shape index: {1}]  }
   0x1   :  { %11 = vsyncpa [#allocation3 + $0x1], 0 }
   0x2   :  { %12 = vsyncpa [#allocation6], 0 }
   0x3   :  { %14 = vsyncpa [#allocation6 + $0x1], 0 }
   0x4   :  { %15 = vsyncpa [#allocation4], 0 }
   0x5   :  { %17 = vsyncpa [#allocation4 + $0x1], 0 }
   0x6   :  { %18 = vsyncpa [#allocation9], 0 }
   0x7   :  { %20 = vsyncpa [#allocation9 + $0x1], 0  ;;  %s729_s12 = smov 0   ;;  %s731_s13 = smov 0  }
   0x8   :  { %s733_s14 = smov 0   ;;  %s735_s15 = smov 0  }
   0x9   :  { %s737_s16 = smov 0   ;;  %s739_s17 = smov 0  }
   0xa LB: > { %s440_s18 = sadd.s32 4294967295, %s702_s17   ;;  %s441_s19 = sadd.s32 4294967294, %s702_s17   ;;  %s702_s17 = sphi %s739_s17, %s26_s17   ;;  %s698_s16 = sphi %s737_s16, %s955_s16   ;;  %s694_s15 = sphi %s735_s15, %s954_s15   ;;  %s690_s14 = sphi %s733_s14, %s953_s14   ;;  %s686_s13 = sphi %s731_s13, %s952_s13   ;;  %s682_s12 = sphi %s729_s12, %s951_s12  }
   0xb   : > { %s38_s20 = sadd.s32 1, %s698_s16  ;;  %s47_s21 = sadd.s32 1, %s690_s14 }
   0xc   : > { %p40_p0 = scmp.ge.s32.totalorder %s38_s20, 2  ;;  %p54_p1 = scmp.ne.s32.totalorder %s690_s14, %s686_s13 }
   0xd   : > { %p55_p2 = scmp.eq.s32.totalorder %s702_s17, 0  ;;  %p60_p3 = scmp.ne.s32.totalorder %s686_s13, %s682_s12 }
   0xe   : > { %s957_s20 = smov (%p40_p0, %s38_s20), 0  ;;  %p61_p5 = scmp.eq.s32.totalorder %s440_s18, 0 }
   0xf   : > { %p770_p4 = por %p55_p2, %p54_p1  ;;  %s42_s23 = ssub.s32 %s698_s16, %s957_s20 }
  0x10   : > { %p112_p6 = scmp.eq.s32.totalorder %s440_s18, 1  ;;  %p45_p7 = scmp.eq.s32.totalorder %s42_s23, 0 }
  0x11   : > { %p776_p8 = por %p61_p5, %p60_p3  ;;  %p118_p10 = scmp.eq.s32.totalorder %s441_s19, 1 }
  0x12   : > { %p780_p9 = por %p112_p6, %p54_p1  ;;  %p481_p13 = scmp.lt.s32.totalorder %s702_s17, 2 }
  0x13   : > { %s785_s26 = scalar_select %p45_p7, %s690_s14, %s47_s21  }
  0x14   : > { %p787_p11 = por %p118_p10, %p60_p3  ;;  %s794_s28 = sand.u32 1, %s690_s14  }
  0x15   : > { %s444_s29 = sshll.u32 %s794_s28, 3  ;;  %s445_s30 = sshll.u32 %s698_s16, 7 }
  0x16   : > { %s174_s6 = scalar_lea.hbm %s940_s0, %s445_s30  ;;  %s168_s7 = scalar_lea.vmem [#allocation2], %s444_s29 }
  0x17   : > { %s176_s8 = sshll.u32 %s168_s7, 4  ;;  %p803_p0 = pnand %p481_p13, %p770_p4  ;;  %s177_s8 = int_to_ptr.vmem [resolvable:$true] %s176_s8 }
  0x18   : > { %p448_p1 = scmp.ge.s32.totalorder %s702_s17, 1  ;;  %p200_p2 = scmp.lt.s32.totalorder %s702_s17, 3 }
  0x19   : > { %s165_s10 = scalar_lea.sflag [#allocation3], %s794_s28  ;;  %p534_p3 = pneg %p803_p0 }
  0x1a   : > { %s545_s11 = scalar_lea.vmem %s177_s8, 128  ;;  %s704_s18 = smov [#allocation2]  }
  0x1b   : > { %p546_p5 = scmp.ne.s32.totalorder %s177_s8, %s545_s11  ;;  %s550_s19 = sshll.u32 %s704_s18, 4  ;;  %s551_s19 = int_to_ptr.vmem [resolvable:$false] %s550_s19 }
  0x1c   : > { %s552_s21 = scalar_lea.vmem %s551_s19, 256  ;;  %p553_p4 = scmp.lt.s32.totalorder %s177_s8, %s551_s19 }
  0x1d   : > { %p548_p6 = pnand %p546_p5, %p534_p3  ;;  %p554_p10 = scmp.lt.s32.totalorder %s552_s21, %s545_s11 }
  0x1f   : > { %p549_p7 = pneg %p548_p6  ;;  %p555_p13 = por %p554_p10, %p553_p4 }
  0x21   : > { %p556_p12 = pnand %p555_p13, %p549_p7 }
  0x23   : > { %559 = shalt.err (!%p556_p12)
}
  0x24   : > { %470 = dma.hbm_to_vmem [thread:$0]  (!%p803_p0), %s174_s6, 128, %s177_s8, %s165_s10  }
  0x25   : > { %p821_p5 = pnand %p448_p1, %p200_p2  ;;  %s193_s5 = scalar_lea.hbm %s941_s1, %s445_s30 }
  0x26   : > { %s187_s7 = scalar_lea.vmem [#allocation5], %s444_s29  ;;  %s184_s18 = scalar_lea.sflag [#allocation6], %s794_s28 }
  0x27   : > { %s195_s11 = sshll.u32 %s187_s7, 4  ;;  %s705_s6 = smov [#allocation5]   ;;  %s196_s11 = int_to_ptr.vmem [resolvable:$true] %s195_s11 }
  0x28   : > { %s573_s19 = scalar_lea.vmem %s196_s11, 128  ;;  %s578_s8 = sshll.u32 %s705_s6, 4  ;;  %s579_s8 = int_to_ptr.vmem [resolvable:$false] %s578_s8 }
  0x29   : > { %p574_p12 = scmp.ne.s32.totalorder %s196_s11, %s573_s19  ;;  %s580_s10 = scalar_lea.vmem %s579_s8, 256 }
  0x2a   : > { %p581_p1 = scmp.lt.s32.totalorder %s196_s11, %s579_s8  ;;  %p582_p2 = scmp.lt.s32.totalorder %s580_s10, %s573_s19 }
  0x2b   : > { %p576_p6 = pnand %p574_p12, %p534_p3 }
  0x2c   : > { %p583_p4 = por %p582_p2, %p581_p1 }
  0x2d   : > { %p577_p7 = pneg %p576_p6 }
  0x2f   : > { %p584_p10 = pnand %p583_p4, %p577_p7 }
  0x31   : > { %587 = shalt.err (!%p584_p10)
}
  0x32   : > { %473 = dma.hbm_to_vmem [thread:$0]  (!%p803_p0), %s193_s5, 128, %s196_s11, %s184_s18  }
  0x33   : > { %204 = sbr.rel (%p821_p5) target bundleno = 106 (0x6a), region = 28  ;;  %s837_s28 = sand.u32 (!%p821_p5), 1, %s686_s13  }
  0x34   : > { %s840_s29 = sshll.u32 (!%p821_p5), %s837_s28, 3  ;;  %s207_s30 = scalar_lea.sflag (!%p821_p5), [#allocation3], %s837_s28 }
  0x35   : > { %s210_s21 = scalar_lea.vmem (!%p821_p5), [#allocation2], %s840_s29 }
  0x38   : > { %665 = dma.done.wait (%p776_p8), %s207_s30, 128  }
  0x39   : > { %667 = vsyncadd (%p776_p8), %s207_s30, 4294967168  ;;  %s216_s9 = scalar_lea.sflag [#allocation6], %s837_s28  ;;  %s219_s22 = scalar_lea.vmem [#allocation5], %s840_s29 }
  0x3a   : > { %669 = dma.done.wait (%p776_p8), %s216_s9, 128  }
  0x3b   : > { %671 = vsyncadd (%p776_p8), %s216_s9, 4294967168  ;;  %v258_v0 = vld [vmem:[%s219_s22] sm:$0xff]  ;;  %v259_v1 = vld [vmem:[%s210_s21] sm:$0xff]  ;;  %s455_s23 = sshll.u32 %s694_s15, 7  ;;  %s251_s4 = scalar_lea.vmem [#allocation8], %s840_s29  ;;  %v706_v3 = vmov 0.0  }
  0x3c   : > { %s305_s5 = sshll.u32 %s251_s4, 4  ;;  %vm260_vm0 = vcmp.gt.f32.partialorder %v258_v0, 0.0  ;;  %v261_v2 = vsub.f32 %v258_v0, %v259_v1  ;;  %s244_s7 = scalar_lea.vmem [#allocation7], %s840_s29  ;;  %s864_s5 = int_to_ptr.vmem [resolvable:$true] %s305_s5 }
  0x3d   : > { %v264_v4 = vsel %vm260_vm0, 1.0, %v706_v3  ;;  %s292_s11 = sshll.u32 %s244_s7, 4  ;;  %s862_s19 = scalar_lea.hbm %s943_s3, %s455_s23  ;;  %s871_s11 = int_to_ptr.vmem [resolvable:$true] %s292_s11 }
  0x3e   : > { %v262_v5 = vsel %vm260_vm0, %v261_v2, 0.0  ;;  %272 = vst [vmem:[%s251_s4] sm:$0xff] %v264_v4  ;;  %s869_s8 = scalar_lea.hbm %s942_s2, %s455_s23  ;;  %s279_s10 = scalar_lea.sflag [#allocation9], %s837_s28 }
  0x3f   : > { %v263_v6 = vmul.f32 %v262_v5, %v262_v5  ;;  %s588_s30 = scalar_lea.vmem %s864_s5, 128  ;;  %s707_s21 = smov [#allocation8]  }
  0x40   : > { %p589_p8 = scmp.ne.s32.totalorder %s864_s5, %s588_s30  ;;  %s592_s9 = sshll.u32 %s707_s21, 4  ;;  %s593_s9 = int_to_ptr.vmem [resolvable:$false] %s592_s9 }
  0x41   : > { %s594_s22 = scalar_lea.vmem %s593_s9, 256  ;;  %p595_p13 = scmp.lt.s32.totalorder %s864_s5, %s593_s9 }
  0x42   : > { %p590_p0 = pnand %p589_p8, %p780_p9  ;;  %p596_p5 = scmp.lt.s32.totalorder %s594_s22, %s588_s30 }
  0x44   : > { %p591_p3 = pneg %p590_p0  ;;  %p597_p12 = por %p596_p5, %p595_p13 }
  0x46   : > { %p598_p6 = pnand %p597_p12, %p591_p3 }
  0x48   : > { %601 = shalt.err (!%p598_p6)
}
  0x49   : > { %s602_s23 = scalar_lea.hbm %s862_s19, 128  ;;  %s606_s18 = scalar_lea.hbm %s943_s3, 256 }
  0x4a   : > { %p603_p7 = scmp.ne.s32.totalorder %s862_s19, %s602_s23  ;;  %p607_p4 = scmp.lt.s32.totalorder %s862_s19, %s943_s3 }
  0x4b   : > { %p608_p10 = scmp.lt.s32.totalorder %s606_s18, %s602_s23 }
  0x4c   : > { %p604_p1 = pnand %p603_p7, %p780_p9 }
  0x4d   : > { %p609_p8 = por %p608_p10, %p607_p4 }
  0x4e   : > { %p605_p2 = pneg %p604_p1 }
  0x50   : > { %p610_p0 = pnand %p609_p8, %p605_p2 }
  0x52   : > { %613 = shalt.err (!%p610_p0)
}
  0x53   : > { %464 = dma.vmem_to_hbm [thread:$0]  (%p780_p9), %s864_s5, 128, %s862_s19, %s279_s10   ;;  %268 = vst [vmem:[%s244_s7] sm:$0xff] %v263_v6 }
  0x54   : > { %s274_s30 = scalar_lea.sflag [#allocation4], %s837_s28  ;;  %s614_s21 = scalar_lea.vmem %s871_s11, 128 }
  0x55   : > { %p615_p3 = scmp.ne.s32.totalorder %s871_s11, %s614_s21  ;;  %s708_s9 = smov [#allocation7]  }
  0x56   : > { %s618_s22 = sshll.u32 %s708_s9, 4  ;;  %s619_s22 = int_to_ptr.vmem [resolvable:$false] %s618_s22 }
  0x57   : > { %p616_p13 = pnand %p615_p3, %p780_p9  ;;  %s620_s23 = scalar_lea.vmem %s619_s22, 256 }
  0x58   : > { %p621_p12 = scmp.lt.s32.totalorder %s871_s11, %s619_s22  ;;  %p622_p6 = scmp.lt.s32.totalorder %s620_s23, %s614_s21 }
  0x59   : > { %p617_p5 = pneg %p616_p13 }
  0x5a   : > { %p623_p7 = por %p622_p6, %p621_p12 }
  0x5c   : > { %p624_p1 = pnand %p623_p7, %p617_p5 }
  0x5e   : > { %627 = shalt.err (!%p624_p1)
}
  0x5f   : > { %s628_s29 = scalar_lea.hbm %s869_s8, 128  ;;  %s632_s7 = scalar_lea.hbm %s942_s2, 256 }
  0x60   : > { %p629_p2 = scmp.ne.s32.totalorder %s869_s8, %s628_s29  ;;  %p633_p8 = scmp.lt.s32.totalorder %s869_s8, %s942_s2 }
  0x61   : > { %p634_p0 = scmp.lt.s32.totalorder %s632_s7, %s628_s29 }
  0x62   : > { %p630_p4 = pnand %p629_p2, %p780_p9 }
  0x63   : > { %p635_p3 = por %p634_p0, %p633_p8 }
  0x64   : > { %p631_p10 = pneg %p630_p4 }
  0x66   : > { %p636_p13 = pnand %p635_p3, %p631_p10 }
  0x68   : > { %639 = shalt.err (!%p636_p13)
}
  0x69   : > { %463 = dma.vmem_to_hbm [thread:$0]  (%p780_p9), %s871_s11, 128, %s869_s8, %s274_s30  }
  0x6a PF: > { %s317_s4 = sand.u32 1, %s682_s12   ;;  %p950_p5 = scmp.ge.s32.totalorder %s702_s17, 2 }
  0x6b   : > { %s318_s24 = scalar_lea.sflag [#allocation4], %s317_s4 }
  0x6c   : > { %p475_p12 = pnand %p950_p5, %p787_p11 }
  0x6e   : > { %p476_p6 = pneg %p475_p12 }
  0x70   : > { %673 = dma.done.wait (%p476_p6), %s318_s24, 128  }
  0x71   : > { %675 = vsyncadd (%p476_p6), %s318_s24, 4294967168  ;;  %s327_s18 = scalar_lea.sflag [#allocation9], %s317_s4 }
  0x72   : > { %677 = dma.done.wait (%p476_p6), %s327_s18, 128  }
  0x73   : > { %679 = vsyncadd (%p476_p6), %s327_s18, 4294967168  ;;  %s26_s17 = sadd.s32 1, %s702_s17   ;;  %s951_s12 = smov %s686_s13 }
  0x74   : > { %p23_p7 = scmp.ge.s32.totalorder %s26_s17, 4   ;;  %s952_s13 = smov %s690_s14 }
  0x75   : > { %s953_s14 = smov %s785_s26  ;;  %s954_s15 = smov %s698_s16 }
  0x76   : > { %s955_s16 = smov %s957_s20  ;;  %25 = sbr.rel (!%p23_p7) target bundleno = 10 (0xa), region = 107 }
  0x7b   :  { %332 = vsyncpa [#allocation3], 1 }
  0x7c   :  { %334 = vsyncpa [#allocation3 + $0x1], 1 }
  0x7d   :  { %335 = vsyncpa [#allocation6], 1 }
  0x7e   :  { %337 = vsyncpa [#allocation6 + $0x1], 1 }
  0x7f   :  { %338 = vsyncpa [#allocation4], 1 }
  0x80   :  { %340 = vsyncpa [#allocation4 + $0x1], 1 }
  0x81   :  { %341 = vsyncpa [#allocation9], 1 }
  0x82   :  { %343 = vsyncpa [#allocation9 + $0x1], 1 }

</bundles_post_ra>
